<compile_context>
chip_gen: v6e
topology: v6e:2x2x1
jax: 0.10.0
libtpu: 0.0.40
codegen_flags: <defaults>
</compile_context>

<pallas_src>
import jax
import jax.numpy as jnp
from jax import lax
from jax.experimental import pallas as pl
from jax.experimental.pallas import tpu as pltpu


SMOOTH = 1.0
P_POW = 2            # self.p == 2 -> implemented as x*x (single VALU multiply)
REDUCTION = "mean"   # self.reduction
_LANES = 128


def _choose_tile_rows(C, itemsize, total_rows):
    """Rows of 128 HW positions per tile: ~4 MiB per (C, rows, 128) input
    buffer (2 inputs x 2 pipeline buffers + 3 dense f32 accumulators stays
    well under the explicit VMEM limit on v5e/v6e/v7x).  Floor of 8 rows
    (>=1024 contiguous positions) keeps DMA rows efficient for large C."""
    budget_bytes = 4 << 20
    rows = budget_bytes // max(1, C * _LANES * itemsize)
    rows = max(8, (rows // 8) * 8)          # sublane-dense multiples of 8
    if rows >= total_rows:
        return total_rows                   # single tile: full-dim block is legal
    return rows


def _make_kernel(tile_rows, tile_pos, hw_true, full_tiles, steps_per_split,
                 needs_mask):
    def kernel(pred_ref, targ_ref, inter_ref, psq_ref, tsq_ref,
               inter_acc, psq_acc, tsq_acc):
        s = pl.program_id(1)                       # HW split (core parallel)
        k = pl.program_id(2)                       # HW step within the split
        g = s * steps_per_split + k                # global HW-tile index

        @pl.when(k == 0)
        def _init():
            inter_acc[...] = jnp.zeros_like(inter_acc)
            psq_acc[...] = jnp.zeros_like(psq_acc)
            tsq_acc[...] = jnp.zeros_like(tsq_acc)

        p = pred_ref[0].astype(jnp.float32)        # (C, tile_rows, 128)
        t = targ_ref[0].astype(jnp.float32)        # (C, tile_rows, 128)

        # numerically stable softmax pieces; channel is a LEADING dim so both
        # the max and the sums are pure VALU ops (no cross-sublane XLU work).
        m = jnp.max(p, axis=0)                     # (tile_rows, 128)
        e = jnp.exp(p - m)                         # EUP
        denom = jnp.sum(e, axis=0)                 # (tile_rows, 128)

        # Accumulate sum_C(e*t), sum_C(e*e), sum_C(t*t); the softmax reciprocal
        # is applied once per position AFTER the channel reduction (saves 1-2
        # VALU multiplies per element -> stays HBM-bound on v7x).
        et = jnp.sum(e * t, axis=0)
        ee = jnp.sum(e * e, axis=0)
        tt = jnp.sum(t * t, axis=0)                # x*x, not **2
        r = pl.reciprocal(denom, approx=False)     # exact: keeps 1e-5 tolerance
        ci = et * r                                # per-position sum_C(sm*t)
        cs = ee * (r * r)                          # per-position sum_C(sm*sm)

        if needs_mask:
            # Interior tiles (all positions < hw) accumulate with zero overhead.
            @pl.when(g < full_tiles)
            def _acc_fast():
                inter_acc[...] += ci
                psq_acc[...] += cs
                tsq_acc[...] += tt

            # Only tiles that can reach positions >= hw pay for the mask.
            @pl.when(g >= full_tiles)
            def _acc_masked():
                row = lax.broadcasted_iota(jnp.int32, (tile_rows, _LANES), 0)
                lane = lax.broadcasted_iota(jnp.int32, (tile_rows, _LANES), 1)
                pos = g * tile_pos + row * _LANES + lane
                valid = pos < hw_true
                # jnp.where (not mask-multiply): robust even if the OOB tail of
                # the DMA buffer holds garbage that turned into NaN/Inf in exp.
                inter_acc[...] += jnp.where(valid, ci, 0.0)
                psq_acc[...] += jnp.where(valid, cs, 0.0)
                tsq_acc[...] += jnp.where(valid, tt, 0.0)
        else:
            inter_acc[...] += ci
            psq_acc[...] += cs
            tsq_acc[...] += tt

        @pl.when(k == pl.num_programs(2) - 1)
        def _finalize():
            inter_ref[...] = jnp.full(inter_ref.shape, jnp.sum(inter_acc[...]),
                                      dtype=jnp.float32)
            psq_ref[...] = jnp.full(psq_ref.shape, jnp.sum(psq_acc[...]),
                                    dtype=jnp.float32)
            tsq_ref[...] = jnp.full(tsq_ref.shape, jnp.sum(tsq_acc[...]),
                                    dtype=jnp.float32)

    return kernel


def dice_loss(predict, target, smooth=SMOOTH, reduction=REDUCTION,
              bf16_targets=False):
    """predict, target: (N, C, *) arrays of identical shape (any float dtype)."""
    assert predict.shape == target.shape, "predict & target shape do not match"
    N, C = int(predict.shape[0]), int(predict.shape[1])
    hw = 1
    for d in predict.shape[2:]:
        hw *= int(d)

    total_rows = pl.cdiv(hw, _LANES)
    pred3 = predict.reshape(N, C, hw)
    targ3 = target.reshape(N, C, hw)
    if hw % _LANES != 0:
        # TODO(synk): ragged HW tail still takes a <=127-element zero pad so the
        # free (N, C, R, 128) reshape stays legal; a fully pad-free ragged path
        # needs a second (channel-on-sublane) kernel variant.
        pad = total_rows * _LANES - hw
        pred3 = jnp.pad(pred3, ((0, 0), (0, 0), (0, pad)))
        targ3 = jnp.pad(targ3, ((0, 0), (0, 0), (0, pad)))
    pred4 = pred3.reshape(N, C, total_rows, _LANES)    # free reshape, HW-dense
    targ4 = targ3.reshape(N, C, total_rows, _LANES)
    if bf16_targets:
        # Exact for 0/1 one-hot targets; halves target HBM traffic.
        targ4 = targ4.astype(jnp.bfloat16)

    itemsize = max(jnp.dtype(pred4.dtype).itemsize,
                   jnp.dtype(targ4.dtype).itemsize)
    tile_rows = _choose_tile_rows(C, itemsize, total_rows)
    tile_pos = tile_rows * _LANES                      # HW positions per tile
    n_tiles = pl.cdiv(total_rows, tile_rows)

    # Use both v7x TensorCores even at batch 1 by splitting the HW reduction.
    n_split = 2 if (N == 1 and n_tiles >= 2) else 1
    steps_per_split = pl.cdiv(n_tiles, n_split)
    overrun = n_split * steps_per_split > n_tiles      # ragged split
    full_tiles = hw // tile_pos                        # tiles fully < hw
    needs_mask = (n_split * steps_per_split * tile_pos) > hw
    last_tile = n_tiles - 1

    def in_map(n, s, k):
        g = s * steps_per_split + k
        if overrun:
            g = jnp.minimum(g, last_tile)              # duplicate read, masked out
        return (n, 0, g, 0)

    def out_map(n, s, k):
        return (n, s, 0)

    kernel = _make_kernel(tile_rows, tile_pos, hw, full_tiles,
                          steps_per_split, needs_mask)

    elems = N * C * total_rows * _LANES
    cost = pl.CostEstimate(
        flops=int(10 * elems),
        transcendentals=int(elems),
        bytes_accessed=int(pred4.size * jnp.dtype(pred4.dtype).itemsize
                           + targ4.size * jnp.dtype(targ4.dtype).itemsize
                           + 3 * N * n_split * _LANES * 4),
    )

    # Worst-case VMEM: 2 inputs x 2 pipeline buffers x ~4 MiB + 3 dense f32
    # accumulators (~3 MiB) ~= 19 MiB; 48 MiB limit fits v7x's 64 MiB physical
    # and is far below v5e/v6e's 128 MiB physical.
    vmem_limit = 48 * 1024 * 1024

    inter, psq, tsq = pl.pallas_call(
        kernel,
        out_shape=(
            jax.ShapeDtypeStruct((N, n_split, _LANES), jnp.float32),
            jax.ShapeDtypeStruct((N, n_split, _LANES), jnp.float32),
            jax.ShapeDtypeStruct((N, n_split, _LANES), jnp.float32),
        ),
        grid_spec=pltpu.PrefetchScalarGridSpec(
            num_scalar_prefetch=0,
            grid=(N, n_split, steps_per_split),
            in_specs=[
                pl.BlockSpec((1, C, tile_rows, _LANES), in_map),
                pl.BlockSpec((1, C, tile_rows, _LANES), in_map),
            ],
            out_specs=[
                pl.BlockSpec((1, 1, _LANES), out_map),
                pl.BlockSpec((1, 1, _LANES), out_map),
                pl.BlockSpec((1, 1, _LANES), out_map),
            ],
            scratch_shapes=[pltpu.VMEM((tile_rows, _LANES), jnp.float32)] * 3,
        ),
        compiler_params=pltpu.CompilerParams(
            dimension_semantics=("parallel", "parallel", "arbitrary"),
            vmem_limit_bytes=vmem_limit,
        ),
        cost_estimate=cost,
    )(pred4, targ4)

    # Finish the (tiny) dice formula in the wrapper: combine split partials,
    # per-sample loss, then the 'mean' reduction over the batch.
    inter_s = jnp.sum(inter[:, :, 0], axis=1)
    psq_s = jnp.sum(psq[:, :, 0], axis=1)
    tsq_s = jnp.sum(tsq[:, :, 0], axis=1)
    num = 2.0 * (inter_s + smooth)
    den = psq_s + tsq_s + smooth
    loss = 1.0 - num / den
    if reduction == "mean":
        return jnp.mean(loss)
    if reduction == "sum":
        return jnp.sum(loss)
    return loss                                       # 'none'


def _reference_dice_loss(predict, target):
    # pure-JAX reference mirroring the PyTorch forward
    N = predict.shape[0]
    sm = jax.nn.softmax(predict, axis=1)
    p = sm.reshape(N, -1)
    t = target.reshape(N, -1)
    num = 2.0 * (jnp.sum(p * t, axis=1) + SMOOTH)
    den = jnp.sum(p ** P_POW, axis=1) + jnp.sum(t ** P_POW, axis=1) + SMOOTH
    loss = 1.0 - num / den
    return jnp.mean(loss)


if __name__ == "__main__":
    key = jax.random.PRNGKey(0)
    k1, k2 = jax.random.split(key)

    N, C, H, W = 2, 4, 16, 16
    predict = jax.random.normal(k1, (N, C, H, W), dtype=jnp.float32)
    # one-hot target of the same shape as predict (as the docstring requires)
    labels = jax.random.randint(k2, (N, H, W), 0, C)
    target = jax.nn.one_hot(labels, C, dtype=jnp.float32)        # (N, H, W, C)
    target = jnp.transpose(target, (0, 3, 1, 2))                 # (N, C, H, W)

    out = dice_loss(predict, target)
    jax.block_until_ready(out)

    ref = _reference_dice_loss(predict, target)
    assert jnp.allclose(out, ref, atol=1e-5, rtol=1e-5), (out, ref)

    print("KERNEL_OK")
</pallas_src>

<mosaic_0001>
module attributes {stable_mosaic.version = 11 : i64} {
  func.func @kernel(%arg0: i32, %arg1: i32, %arg2: i32, %arg3: memref<1x4x2x128xf32, #tpu.memory_space<vmem>>, %arg4: memref<1x4x2x128xf32, #tpu.memory_space<vmem>>, %arg5: memref<1x1x128xf32, #tpu.memory_space<vmem>>, %arg6: memref<1x1x128xf32, #tpu.memory_space<vmem>>, %arg7: memref<1x1x128xf32, #tpu.memory_space<vmem>>, %arg8: memref<2x128xf32, #tpu.memory_space<vmem>>, %arg9: memref<2x128xf32, #tpu.memory_space<vmem>>, %arg10: memref<2x128xf32, #tpu.memory_space<vmem>>) attributes {dimension_semantics = [#tpu.dimension_semantics<parallel>, #tpu.dimension_semantics<parallel>, #tpu.dimension_semantics<arbitrary>], iteration_bounds = array<i64: 2, 1, 1>, scalar_prefetch = 0 : i64, scratch_operands = 3 : i64, tpu.core_type = #tpu.core_type<tc>, window_params = [{transform_indices = @transform_0, window_bounds = array<i64: 1, 4, 2, 128>}, {transform_indices = @transform_1, window_bounds = array<i64: 1, 4, 2, 128>}, {transform_indices = @transform_2, window_bounds = array<i64: 1, 1, 128>}, {transform_indices = @transform_3, window_bounds = array<i64: 1, 1, 128>}, {transform_indices = @transform_4, window_bounds = array<i64: 1, 1, 128>}]} {
    %c0_i32 = arith.constant 0 : i32
    %0 = arith.cmpi eq, %arg2, %c0_i32 : i32
    %1 = arith.extui %0 : i1 to i32
    %c0_i32_0 = arith.constant 0 : i32
    %2 = arith.cmpi ne, %1, %c0_i32_0 : i32
    scf.if %2 {
      %cst_26 = arith.constant 0.000000e+00 : f32
      %35 = vector.broadcast %cst_26 : f32 to vector<2x128xf32>
      %c0_27 = arith.constant 0 : index
      %c0_28 = arith.constant 0 : index
      %36 = vector.load %arg8[%c0_27, %c0_28] : memref<2x128xf32, #tpu.memory_space<vmem>>, vector<2x128xf32>
      tpu.vector_store %arg8[%c0_27, %c0_28], %35 {strides = array<i32>} : memref<2x128xf32, #tpu.memory_space<vmem>>, vector<2x128xf32>,
      %cst_29 = arith.constant 0.000000e+00 : f32
      %37 = vector.broadcast %cst_29 : f32 to vector<2x128xf32>
      %c0_30 = arith.constant 0 : index
      %c0_31 = arith.constant 0 : index
      %38 = vector.load %arg9[%c0_30, %c0_31] : memref<2x128xf32, #tpu.memory_space<vmem>>, vector<2x128xf32>
      tpu.vector_store %arg9[%c0_30, %c0_31], %37 {strides = array<i32>} : memref<2x128xf32, #tpu.memory_space<vmem>>, vector<2x128xf32>,
      %cst_32 = arith.constant 0.000000e+00 : f32
      %39 = vector.broadcast %cst_32 : f32 to vector<2x128xf32>
      %c0_33 = arith.constant 0 : index
      %c0_34 = arith.constant 0 : index
      %40 = vector.load %arg10[%c0_33, %c0_34] : memref<2x128xf32, #tpu.memory_space<vmem>>, vector<2x128xf32>
      tpu.vector_store %arg10[%c0_33, %c0_34], %39 {strides = array<i32>} : memref<2x128xf32, #tpu.memory_space<vmem>>, vector<2x128xf32>,
    } else {
    }
    %c0 = arith.constant 0 : index
    %c0_1 = arith.constant 0 : index
    %c0_2 = arith.constant 0 : index
    %c0_3 = arith.constant 0 : index
    %3 = vector.load %arg3[%c0, %c0_1, %c0_2, %c0_3] : memref<1x4x2x128xf32, #tpu.memory_space<vmem>>, vector<1x4x2x128xf32>
    %4 = vector.shape_cast %3 : vector<1x4x2x128xf32> to vector<4x2x128xf32>
    %c0_4 = arith.constant 0 : index
    %c0_5 = arith.constant 0 : index
    %c0_6 = arith.constant 0 : index
    %c0_7 = arith.constant 0 : index
    %5 = vector.load %arg4[%c0_4, %c0_5, %c0_6, %c0_7] : memref<1x4x2x128xf32, #tpu.memory_space<vmem>>, vector<1x4x2x128xf32>
    %6 = vector.shape_cast %5 : vector<1x4x2x128xf32> to vector<4x2x128xf32>
    %cst = arith.constant dense<0xFF800000> : vector<2x128xf32>
    %7 = vector.multi_reduction <maximumf>, %4, %cst [0] : vector<4x2x128xf32> to vector<2x128xf32>
    %8 = vector.shape_cast %7 : vector<2x128xf32> to vector<1x2x128xf32>
    %9 = vector.broadcast %8 : vector<1x2x128xf32> to vector<4x2x128xf32>
    %10 = arith.subf %4, %9 : vector<4x2x128xf32>
    %11 = math.exp %10 : vector<4x2x128xf32>
    %cst_8 = arith.constant dense<0.000000e+00> : vector<2x128xf32>
    %12 = vector.multi_reduction <add>, %11, %cst_8 [0] : vector<4x2x128xf32> to vector<2x128xf32>
    %13 = arith.mulf %11, %6 : vector<4x2x128xf32>
    %cst_9 = arith.constant dense<0.000000e+00> : vector<2x128xf32>
    %14 = vector.multi_reduction <add>, %13, %cst_9 [0] : vector<4x2x128xf32> to vector<2x128xf32>
    %15 = arith.mulf %11, %11 : vector<4x2x128xf32>
    %cst_10 = arith.constant dense<0.000000e+00> : vector<2x128xf32>
    %16 = vector.multi_reduction <add>, %15, %cst_10 [0] : vector<4x2x128xf32> to vector<2x128xf32>
    %17 = arith.mulf %6, %6 : vector<4x2x128xf32>
    %cst_11 = arith.constant dense<0.000000e+00> : vector<2x128xf32>
    %18 = vector.multi_reduction <add>, %17, %cst_11 [0] : vector<4x2x128xf32> to vector<2x128xf32>
    %19 = tpu.reciprocal %12 : vector<2x128xf32> -> vector<2x128xf32>
    %20 = arith.mulf %14, %19 : vector<2x128xf32>
    %21 = arith.mulf %19, %19 : vector<2x128xf32>
    %22 = arith.mulf %16, %21 : vector<2x128xf32>
    %c0_12 = arith.constant 0 : index
    %c0_13 = arith.constant 0 : index
    %23 = vector.load %arg8[%c0_12, %c0_13] : memref<2x128xf32, #tpu.memory_space<vmem>>, vector<2x128xf32>
    %24 = arith.addf %23, %20 : vector<2x128xf32>
    %c0_14 = arith.constant 0 : index
    %c0_15 = arith.constant 0 : index
    %25 = vector.load %arg8[%c0_14, %c0_15] : memref<2x128xf32, #tpu.memory_space<vmem>>, vector<2x128xf32>
    tpu.vector_store %arg8[%c0_14, %c0_15], %24 {strides = array<i32>} : memref<2x128xf32, #tpu.memory_space<vmem>>, vector<2x128xf32>,
    %c0_16 = arith.constant 0 : index
    %c0_17 = arith.constant 0 : index
    %26 = vector.load %arg9[%c0_16, %c0_17] : memref<2x128xf32, #tpu.memory_space<vmem>>, vector<2x128xf32>
    %27 = arith.addf %26, %22 : vector<2x128xf32>
    %c0_18 = arith.constant 0 : index
    %c0_19 = arith.constant 0 : index
    %28 = vector.load %arg9[%c0_18, %c0_19] : memref<2x128xf32, #tpu.memory_space<vmem>>, vector<2x128xf32>
    tpu.vector_store %arg9[%c0_18, %c0_19], %27 {strides = array<i32>} : memref<2x128xf32, #tpu.memory_space<vmem>>, vector<2x128xf32>,
    %c0_20 = arith.constant 0 : index
    %c0_21 = arith.constant 0 : index
    %29 = vector.load %arg10[%c0_20, %c0_21] : memref<2x128xf32, #tpu.memory_space<vmem>>, vector<2x128xf32>
    %30 = arith.addf %29, %18 : vector<2x128xf32>
    %c0_22 = arith.constant 0 : index
    %c0_23 = arith.constant 0 : index
    %31 = vector.load %arg10[%c0_22, %c0_23] : memref<2x128xf32, #tpu.memory_space<vmem>>, vector<2x128xf32>
    tpu.vector_store %arg10[%c0_22, %c0_23], %30 {strides = array<i32>} : memref<2x128xf32, #tpu.memory_space<vmem>>, vector<2x128xf32>,
    %c0_i32_24 = arith.constant 0 : i32
    %32 = arith.cmpi eq, %arg2, %c0_i32_24 : i32
    %33 = arith.extui %32 : i1 to i32
    %c0_i32_25 = arith.constant 0 : i32
    %34 = arith.cmpi ne, %33, %c0_i32_25 : i32
    scf.if %34 {
      %c0_26 = arith.constant 0 : index
      %c0_27 = arith.constant 0 : index
      %35 = vector.load %arg8[%c0_26, %c0_27] : memref<2x128xf32, #tpu.memory_space<vmem>>, vector<2x128xf32>
      %36 = vector.shape_cast %35 : vector<2x128xf32> to vector<1x2x128xf32>
      %cst_28 = arith.constant dense<0.000000e+00> : vector<1xf32>
      %37 = vector.multi_reduction <add>, %36, %cst_28 [1, 2] : vector<1x2x128xf32> to vector<1xf32>
      %38 = vector.shape_cast %37 : vector<1xf32> to vector<1x1x1xf32>
      %39 = vector.extract %38[0, 0, 0] : f32 from vector<1x1x1xf32>
      %40 = vector.broadcast %39 : f32 to vector<1x1x128xf32>
      %c0_29 = arith.constant 0 : index
      %c0_30 = arith.constant 0 : index
      %c0_31 = arith.constant 0 : index
      %41 = vector.load %arg5[%c0_29, %c0_30, %c0_31] : memref<1x1x128xf32, #tpu.memory_space<vmem>>, vector<1x1x128xf32>
      tpu.vector_store %arg5[%c0_29, %c0_30, %c0_31], %40 {strides = array<i32>} : memref<1x1x128xf32, #tpu.memory_space<vmem>>, vector<1x1x128xf32>,
      %c0_32 = arith.constant 0 : index
      %c0_33 = arith.constant 0 : index
      %42 = vector.load %arg9[%c0_32, %c0_33] : memref<2x128xf32, #tpu.memory_space<vmem>>, vector<2x128xf32>
      %43 = vector.shape_cast %42 : vector<2x128xf32> to vector<1x2x128xf32>
      %cst_34 = arith.constant dense<0.000000e+00> : vector<1xf32>
      %44 = vector.multi_reduction <add>, %43, %cst_34 [1, 2] : vector<1x2x128xf32> to vector<1xf32>
      %45 = vector.shape_cast %44 : vector<1xf32> to vector<1x1x1xf32>
      %46 = vector.extract %45[0, 0, 0] : f32 from vector<1x1x1xf32>
      %47 = vector.broadcast %46 : f32 to vector<1x1x128xf32>
      %c0_35 = arith.constant 0 : index
      %c0_36 = arith.constant 0 : index
      %c0_37 = arith.constant 0 : index
      %48 = vector.load %arg6[%c0_35, %c0_36, %c0_37] : memref<1x1x128xf32, #tpu.memory_space<vmem>>, vector<1x1x128xf32>
      tpu.vector_store %arg6[%c0_35, %c0_36, %c0_37], %47 {strides = array<i32>} : memref<1x1x128xf32, #tpu.memory_space<vmem>>, vector<1x1x128xf32>,
      %c0_38 = arith.constant 0 : index
      %c0_39 = arith.constant 0 : index
      %49 = vector.load %arg10[%c0_38, %c0_39] : memref<2x128xf32, #tpu.memory_space<vmem>>, vector<2x128xf32>
      %50 = vector.shape_cast %49 : vector<2x128xf32> to vector<1x2x128xf32>
      %cst_40 = arith.constant dense<0.000000e+00> : vector<1xf32>
      %51 = vector.multi_reduction <add>, %50, %cst_40 [1, 2] : vector<1x2x128xf32> to vector<1xf32>
      %52 = vector.shape_cast %51 : vector<1xf32> to vector<1x1x1xf32>
      %53 = vector.extract %52[0, 0, 0] : f32 from vector<1x1x1xf32>
      %54 = vector.broadcast %53 : f32 to vector<1x1x128xf32>
      %c0_41 = arith.constant 0 : index
      %c0_42 = arith.constant 0 : index
      %c0_43 = arith.constant 0 : index
      %55 = vector.load %arg7[%c0_41, %c0_42, %c0_43] : memref<1x1x128xf32, #tpu.memory_space<vmem>>, vector<1x1x128xf32>
      tpu.vector_store %arg7[%c0_41, %c0_42, %c0_43], %54 {strides = array<i32>} : memref<1x1x128xf32, #tpu.memory_space<vmem>>, vector<1x1x128xf32>,
    } else {
    }
    return
  }
  func.func @transform_0(%arg0: i32, %arg1: i32, %arg2: i32) -> (i32, i32, i32, i32) {
    %c1_i32 = arith.constant 1 : i32
    %0 = arith.muli %arg1, %c1_i32 : i32
    %1 = arith.addi %0, %arg2 : i32
    %c0_i32 = arith.constant 0 : i32
    %c0_i32_0 = arith.constant 0 : i32
    %c0_i32_1 = arith.constant 0 : i32
    return %arg0, %c0_i32, %1, %c0_i32_0 : i32, i32, i32, i32
  }
  func.func @transform_1(%arg0: i32, %arg1: i32, %arg2: i32) -> (i32, i32, i32, i32) {
    %c1_i32 = arith.constant 1 : i32
    %0 = arith.muli %arg1, %c1_i32 : i32
    %1 = arith.addi %0, %arg2 : i32
    %c0_i32 = arith.constant 0 : i32
    %c0_i32_0 = arith.constant 0 : i32
    %c0_i32_1 = arith.constant 0 : i32
    return %arg0, %c0_i32, %1, %c0_i32_0 : i32, i32, i32, i32
  }
  func.func @transform_2(%arg0: i32, %arg1: i32, %arg2: i32) -> (i32, i32, i32) {
    %c0_i32 = arith.constant 0 : i32
    %c0_i32_0 = arith.constant 0 : i32
    return %arg0, %arg1, %c0_i32 : i32, i32, i32
  }
  func.func @transform_3(%arg0: i32, %arg1: i32, %arg2: i32) -> (i32, i32, i32) {
    %c0_i32 = arith.constant 0 : i32
    %c0_i32_0 = arith.constant 0 : i32
    return %arg0, %arg1, %c0_i32 : i32, i32, i32
  }
  func.func @transform_4(%arg0: i32, %arg1: i32, %arg2: i32) -> (i32, i32, i32) {
    %c0_i32 = arith.constant 0 : i32
    %c0_i32_0 = arith.constant 0 : i32
    return %arg0, %arg1, %c0_i32 : i32, i32, i32
  }
}

</mosaic_0001>

<bundles_post_ra>
// kernel: tpu_custom_call.1
= control target key start
LH: loop header
LB: loop body
LE: loop exit
PB: predicated region body
PF: predicated region fallthrough
CT: control target
= control target key end

     0   :  { %s1294_s0 = inlined_call_operand.hbm [shape: f32[2,4,2,128], index: 0, kind: input, shape index: {}]   ;;  %s1295_s1 = inlined_call_operand.hbm [shape: f32[2,4,2,128], index: 1, kind: input, shape index: {}]   ;;  %s1296_s2 = inlined_call_operand.hbm [shape: f32[2,1,128], index: 2, kind: output, shape index: {0}]   ;;  %s1297_s3 = inlined_call_operand.hbm [shape: f32[2,1,128], index: 3, kind: output, shape index: {1}]   ;;  %s1298_s4 = inlined_call_operand.hbm [shape: f32[2,1,128], index: 4, kind: output, shape index: {2}]  }
   0x1   :  { %1301 = sst [smem:[#allocation20_spill]] %s1294_s0 }
   0x2   :  { %10 = vsyncpa [#allocation6], 0 }
   0x3   :  { %12 = vsyncpa [#allocation6 + $0x1], 0 }
   0x4   :  { %13 = vsyncpa [#allocation9], 0 }
   0x5   :  { %15 = vsyncpa [#allocation9 + $0x1], 0 }
   0x6   :  { %16 = vsyncpa [#allocation7], 0 }
   0x7   :  { %18 = vsyncpa [#allocation7 + $0x1], 0 }
   0x8   :  { %19 = vsyncpa [#allocation12], 0 }
   0x9   :  { %21 = vsyncpa [#allocation12 + $0x1], 0  ;;  %s999_s15 = smov 0   ;;  %s1001_s16 = smov 0  }
   0xa   :  { %s1003_s17 = smov 0   ;;  %s1005_s18 = smov 0  }
   0xb   :  { %s1007_s19 = smov 0   ;;  %s1009_s20 = smov 0  }
   0xc LB: > { %s1030_s21 = sadd.s32 4294967295, %s964_s20   ;;  %s1299_s22 = sadd.s32 4294967294, %s964_s20   ;;  %s964_s20 = sphi %s1009_s20, %s27_s20   ;;  %s960_s19 = sphi %s1007_s19, %s1319_s19   ;;  %s956_s18 = sphi %s1005_s18, %s1318_s18   ;;  %s952_s17 = sphi %s1003_s17, %s1317_s17   ;;  %s948_s16 = sphi %s1001_s16, %s1316_s16   ;;  %s944_s15 = sphi %s999_s15, %s1315_s15  }
   0xd   : > { %s46_s23 = sadd.s32 1, %s960_s19  ;;  %s57_s24 = sadd.s32 1, %s952_s17 }
   0xe   : > { %p48_p0 = scmp.ge.s32.totalorder %s46_s23, 2  ;;  %p64_p1 = scmp.ne.s32.totalorder %s952_s17, %s948_s16 }
   0xf   : > { %p65_p2 = scmp.eq.s32.totalorder %s964_s20, 0  ;;  %p70_p3 = scmp.ne.s32.totalorder %s948_s16, %s944_s15 }
  0x10   : > { %s1321_s23 = smov (%p48_p0, %s46_s23), 0  ;;  %p71_p5 = scmp.eq.s32.totalorder %s1030_s21, 0 }
  0x11   : > { %1302 = sst [smem:[#allocation18_spill]] %s1321_s23  ;;  %p1042_p4 = por %p65_p2, %p64_p1 }
  0x12   : > { %s52_s26 = ssub.s32 %s960_s19, %s1321_s23  ;;  %p126_p6 = scmp.eq.s32.totalorder %s1030_s21, 1 }
  0x13   : > { %p55_p7 = scmp.eq.s32.totalorder %s52_s26, 0  ;;  %p1050_p8 = por %p71_p5, %p70_p3 }
  0x14   : > { %p1054_p9 = por %p126_p6, %p64_p1  ;;  %p132_p10 = scmp.eq.s32.totalorder %s1299_s22, 1 }
  0x15   : > { %s1061_s29 = scalar_select %p55_p7, %s952_s17, %s57_s24  }
  0x16   : > { %p1063_p11 = por %p132_p10, %p70_p3  ;;  %p655_p12 = scmp.ge.s32.totalorder %s964_s20, 2 }
  0x17   : > { %1306 = sst [smem:[#allocation19_spill]] %s1061_s29  ;;  %p705_p13 = scmp.lt.s32.totalorder %s964_s20, 2 }
  0x18   : > { %s1070_s5 = sand.u32 1, %s952_s17   ;;  %s670_s7 = sshll.u32 %s960_s19, 7 }
  0x19   : > { %s656_s6 = sshll.u32 %s1070_s5, 3  ;;  %s1308_s0 = sld [smem:[#allocation20_spill]] }
  0x1a   : > { %s212_s11 = scalar_lea.vmem [#allocation5], %s656_s6  ;;  %p1083_p0 = pnand %p705_p13, %p1042_p4 }
  0x1b   : > { %s221_s12 = sshll.u32 %s212_s11, 4  ;;  %p662_p1 = scmp.ge.s32.totalorder %s964_s20, 1  ;;  %s222_s12 = int_to_ptr.vmem [resolvable:$true] %s221_s12 }
  0x1c   : > { %s209_s14 = scalar_lea.sflag [#allocation6], %s1070_s5  ;;  %p770_p2 = pneg %p1083_p0 }
  0x1d   : > { %s781_s24 = scalar_lea.vmem %s222_s12, 128  ;;  %s966_s26 = smov [#allocation5]  }
  0x1e   : > { %p782_p3 = scmp.ne.s32.totalorder %s222_s12, %s781_s24  ;;  %s786_s8 = sshll.u32 %s966_s26, 4  ;;  %s787_s8 = int_to_ptr.vmem [resolvable:$false] %s786_s8 }
  0x1f   : > { %s220_s10 = scalar_lea.hbm %s1308_s0, %s670_s7  ;;  %s788_s25 = scalar_lea.vmem %s787_s8, 256 }
  0x20   : > { %p784_p5 = pnand %p782_p3, %p770_p2  ;;  %p789_p4 = scmp.lt.s32.totalorder %s222_s12, %s787_s8 }
  0x21   : > { %p790_p7 = scmp.lt.s32.totalorder %s788_s25, %s781_s24 }
  0x22   : > { %p785_p6 = pneg %p784_p5 }
  0x23   : > { %p791_p10 = por %p790_p7, %p789_p4 }
  0x25   : > { %p792_p13 = pnand %p791_p10, %p785_p6 }
  0x27   : > { %795 = shalt.err (!%p792_p13)
}
  0x28   : > { %s967_s9 = smov 32   ;;  %s968_s11 = smov 2  }
  0x29   : > { %691 = dma.hbm_to_vmem [thread:$0]  (!%p1083_p0), %s220_s10, 128, %s222_s12, %s209_s14, %s967_s9, %s967_s9, %s968_s11  }
  0x2a   : > { %p252_p3 = scmp.lt.s32.totalorder %s964_s20, 3  ;;  %s243_s24 = scalar_lea.hbm %s1295_s1, %s670_s7 }
  0x2b   : > { %s235_s25 = scalar_lea.vmem [#allocation8], %s656_s6  ;;  %s232_s23 = scalar_lea.sflag [#allocation9], %s1070_s5 }
  0x2c   : > { %p1104_p5 = pnand %p662_p1, %p252_p3  ;;  %s244_s0 = sshll.u32 %s235_s25, 4  ;;  %s245_s0 = int_to_ptr.vmem [resolvable:$true] %s244_s0 }
  0x2d   : > { %s809_s29 = scalar_lea.vmem %s245_s0, 128  ;;  %s969_s10 = smov [#allocation8]  }
  0x2e   : > { %p810_p6 = scmp.ne.s32.totalorder %s245_s0, %s809_s29  ;;  %s814_s12 = sshll.u32 %s969_s10, 4  ;;  %s815_s12 = int_to_ptr.vmem [resolvable:$false] %s814_s12 }
  0x2f   : > { %s816_s22 = scalar_lea.vmem %s815_s12, 256  ;;  %p817_p10 = scmp.lt.s32.totalorder %s245_s0, %s815_s12 }
  0x30   : > { %p812_p4 = pnand %p810_p6, %p770_p2  ;;  %p818_p1 = scmp.lt.s32.totalorder %s816_s22, %s809_s29 }
  0x32   : > { %p813_p7 = pneg %p812_p4  ;;  %p819_p13 = por %p818_p1, %p817_p10 }
  0x34   : > { %p820_p3 = pnand %p819_p13, %p813_p7 }
  0x36   : > { %823 = shalt.err (!%p820_p3)
}
  0x37   : > { %694 = dma.hbm_to_vmem [thread:$0]  (!%p1083_p0), %s243_s24, 128, %s245_s0, %s232_s23, %s967_s9, %s967_s9, %s968_s11  }
  0x38   : > { %256 = sbr.rel (%p1104_p5) target bundleno = 387 (0x183), region = 28  ;;  %s1119_s5 = sand.u32 (!%p1104_p5), 1, %s948_s16  }
  0x39   : > { %s663_s6 = sshll.u32 (!%p1104_p5), %s1119_s5, 3  ;;  %s259_s7 = scalar_lea.sflag (!%p1104_p5), [#allocation6], %s1119_s5 }
  0x3a   : > { %s262_s14 = scalar_lea.vmem (!%p1104_p5), [#allocation5], %s663_s6 }
  0x3d   : > { %927 = dma.done.wait (%p1050_p8), %s259_s7, 128  }
  0x3e   : > { %929 = vsyncadd (%p1050_p8), %s259_s7, 4294967168  ;;  %s268_s0 = scalar_lea.sflag [#allocation9], %s1119_s5  ;;  %s271_s23 = scalar_lea.vmem [#allocation8], %s663_s6 }
  0x3f   : > { %931 = dma.done.wait (%p1050_p8), %s268_s0, 128  }
  0x40   : > { %933 = vsyncadd (%p1050_p8), %s268_s0, 4294967168  ;;  %v970_v0 = vmov 0.0   ;;  %vm325_vm0 = vcmask 1041408   ;;  %v321_v1 = vld [vmem:[%s271_s23] sm:$0x3]  ;;  %s1161_s27 = sshll.u32 %s956_s18, 4 }
  0x41   : > { %316 = vst [vmem:[#allocation4] sm:$0x3] %v970_v0  ;;  %314 = vst [vmem:[#allocation2] sm:$0x3] %v970_v0  ;;  %v322_v2 = vld [vmem:[%s271_s23 + $0x2] sm:$0x3]  ;;  %v374_v5 = vmul.f32 %v321_v1, %v321_v1  ;;  %s1172_s25 = scalar_lea.hbm %s1296_s2, %s1161_s27  ;;  %s1187_s7 = scalar_lea.hbm %s1297_s3, %s1161_s27 }
  0x42   : > { %315 = vst [vmem:[#allocation3] sm:$0x3] %v970_v0  ;;  %v323_v3 = vld [vmem:[%s271_s23 + $0x4] sm:$0x3]  ;;  %v1132_v4 = vld [vmem:[%s271_s23 + $0x6] sm:$0x3]  ;;  %v375_v6 = vmul.f32 %v322_v2, %v322_v2 }
  0x43   : > { %v376_v7 = vmul.f32 %v323_v3, %v323_v3  ;;  %v317_v8 = vld [vmem:[%s262_s14] sm:$0x3]  ;;  %v377_v9 = vmul.f32 %v1132_v4, %v1132_v4  ;;  %v318_v10 = vld [vmem:[%s262_s14 + $0x2] sm:$0x3]  ;;  %v319_v11 = vld [vmem:[%s262_s14 + $0x4] sm:$0x3] }
  0x44   : > { %v320_v12 = vld [vmem:[%s262_s14 + $0x6] sm:$0x3]  ;;  %v378_v13 = vsel %vm325_vm0, %v374_v5, 0.0  ;;  %v379_v14 = vsel %vm325_vm0, %v375_v6, 0.0  ;;  %v326_v16 = vsel %vm325_vm0, %v317_v8, -inf  ;;  %v327_v18 = vsel %vm325_vm0, %v318_v10, -inf }
  0x45   : > { %v381_v15 = vsel %vm325_vm0, %v376_v7, 0.0  ;;  %v380_v17 = vadd.f32 %v379_v14, %v378_v13  ;;  %v328_v19 = vsel %vm325_vm0, %v319_v11, -inf  ;;  %v383_v20 = vsel %vm325_vm0, %v377_v9, 0.0  ;;  %s295_s29 = scalar_lea.vmem [#allocation10], %s1119_s5  ;;  %s307_s9 = scalar_lea.vmem [#allocation13], %s1119_s5 }
  0x46   : > { %v329_v21 = vsel %vm325_vm0, %v320_v12, -inf  ;;  %v330_v22 = vmax.f32 %v326_v16, %v327_v18  ;;  %s462_s13 = sshll.u32 %s295_s29, 4  ;;  %s490_s11 = sshll.u32 %s307_s9, 4  ;;  %s1174_s13 = int_to_ptr.vmem [resolvable:$true] %s462_s13  ;;  %s1181_s11 = int_to_ptr.vmem [resolvable:$true] %s490_s11 }
  0x47   : > { %v382_v23 = vadd.f32 %v381_v15, %v380_v17  ;;  %v331_v24 = vmax.f32 %v328_v19, %v329_v21  ;;  %s301_s18 = scalar_lea.vmem [#allocation11], %s1119_s5  ;;  %s441_s14 = scalar_lea.sflag [#allocation7], %s1119_s5 }
  0x48   : > { %v395_v25 = vld [vmem:[#allocation4] sm:$0x3]  ;;  %s1179_s12 = sshll.u32 %s301_s18, 4  ;;  %s824_s0 = scalar_lea.vmem %s1174_s13, 16  ;;  %s1211_s12 = int_to_ptr.vmem [resolvable:$true] %s1179_s12 }
  0x49   : > { %v384_v26 = vadd.f32 %v383_v20, %v382_v23  ;;  %v332_v27 = vmax.f32 %v330_v22, %v331_v24  ;;  %v392_v13 = vld [vmem:[#allocation3] sm:$0x3]  ;;  %p825_p8 = scmp.ne.s32.totalorder %s1174_s13, %s824_s0  ;;  %s971_s23 = smov [#allocation10]  }
  0x4a   : > { %s828_s24 = sshll.u32 %s971_s23, 4  ;;  %s829_s24 = int_to_ptr.vmem [resolvable:$false] %s828_s24 }
  0x4b   : > { %v396_v28 = vadd.f32 %v395_v25, %v384_v26  ;;  %v333_v29 = vsub.f32 %v317_v8, %v332_v27  ;;  %v334_v30 = vsub.f32 %v318_v10, %v332_v27  ;;  %v335_v31 = vsub.f32 %v319_v11, %v332_v27  ;;  %v389_v10 = vld [vmem:[#allocation2] sm:$0x3]  ;;  %p826_p0 = pnand %p825_p8, %p1054_p9  ;;  %s830_s8 = scalar_lea.vmem %s829_s24, 32 }
  0x4c   : > { %v336_v32 = vsub.f32 %v320_v12, %v332_v27  ;;  %p831_p5 = scmp.lt.s32.totalorder %s1174_s13, %s829_s24  ;;  %p832_p6 = scmp.lt.s32.totalorder %s830_s8, %s824_s0 }
  0x4d   : > { %397 = vst [vmem:[#allocation4] sm:$0x3] %v396_v28  ;;  %v337_v33 = vmul.f32 1.442695, %v333_v29  ;;  %v339_v34 = vmul.f32 1.442695, %v334_v30  ;;  %p827_p2 = pneg %p826_p0 }
  0x4e   : > { %v341_v35 = vmul.f32 1.442695, %v335_v31  ;;  %v343_v36 = vmul.f32 1.442695, %v336_v32  ;;  %p833_p4 = por %p832_p6, %p831_p5 }
  0x4f   : > { %758 = vpow2.f32 %v337_v33 }
  0x50   : > { %760 = vpow2.f32 %v339_v34  ;;  %p834_p7 = pnand %p833_p4, %p827_p2 }
  0x51   : > { %762 = vpow2.f32 %v341_v35 }
  0x52   : > { %764 = vpow2.f32 %v343_v36 }
  0x54   : > { %v427_v37 = vld [vmem:[#allocation4] sm:$0x3] }
  0x55   : > { %v428_v38 = vsel %vm325_vm0, %v427_v37, 0.0 }
  0x56   : > { %429 = vadd.xlane.f32.xlu1 %v428_v38 }
  0x5c   : > { %v759_v39 = vpop.eup %758 }
  0x5d   : > { %v761_v40 = vpop.eup %760  ;;  %v345_v41 = vsel %vm325_vm0, %v759_v39, 0.0  ;;  %v352_v48 = vmul.f32 %v759_v39, %v321_v1  ;;  %v363_v51 = vmul.f32 %v759_v39, %v759_v39 }
  0x5e   : > { %v763_v42 = vpop.eup %762  ;;  %v346_v43 = vsel %vm325_vm0, %v761_v40, 0.0  ;;  %v353_v49 = vmul.f32 %v761_v40, %v322_v2  ;;  %v364_v52 = vmul.f32 %v761_v40, %v761_v40 }
  0x5f   : > { %v765_v44 = vpop.eup %764  ;;  %v347_v45 = vadd.f32 %v346_v43, %v345_v41  ;;  %v348_v46 = vsel %vm325_vm0, %v763_v42, 0.0  ;;  %v354_v54 = vmul.f32 %v763_v42, %v323_v3  ;;  %v356_v55 = vsel %vm325_vm0, %v352_v48, 0.0 }
  0x60   : > { %v350_v47 = vsel %vm325_vm0, %v765_v44, 0.0  ;;  %v357_v56 = vsel %vm325_vm0, %v353_v49, 0.0  ;;  %v365_v57 = vmul.f32 %v763_v42, %v763_v42  ;;  %v367_v58 = vsel %vm325_vm0, %v363_v51, 0.0 }
  0x61   : > { %v349_v50 = vadd.f32 %v348_v46, %v347_v45  ;;  %v368_v59 = vsel %vm325_vm0, %v364_v52, 0.0  ;;  %v358_v60 = vadd.f32 %v357_v56, %v356_v55  ;;  %v355_v61 = vmul.f32 %v765_v44, %v1132_v4 }
  0x62   : > { %v359_v62 = vsel %vm325_vm0, %v354_v54, 0.0  ;;  %v369_v63 = vadd.f32 %v368_v59, %v367_v58  ;;  %v366_v0 = vmul.f32 %v765_v44, %v765_v44  ;;  %v370_v1 = vsel %vm325_vm0, %v365_v57, 0.0 }
  0x63   : > { %v351_v53 = vadd.f32 %v350_v47, %v349_v50  ;;  %v360_v2 = vadd.f32 %v359_v62, %v358_v60  ;;  %v361_v3 = vsel %vm325_vm0, %v355_v61, 0.0 }
  0x64   : > { %v371_v5 = vadd.f32 %v370_v1, %v369_v63  ;;  %v372_v6 = vsel %vm325_vm0, %v366_v0, 0.0 }
  0x65   : > { %766 = vrcp.f32 %v351_v53  ;;  %v362_v7 = vadd.f32 %v361_v3, %v360_v2 }
  0x66   : > { %v373_v8 = vadd.f32 %v372_v6, %v371_v5 }
  0x72   : > { %v767_v9 = vpop.eup %766 }
  0x73   : > { %v386_v11 = vmul.f32 %v767_v9, %v362_v7  ;;  %v387_v12 = vmul.f32 %v767_v9, %v767_v9 }
  0x75   : > { %v390_v4 = vadd.f32 %v389_v10, %v386_v11  ;;  %v388_v14 = vmul.f32 %v387_v12, %v373_v8 }
  0x77   : > { %391 = vst [vmem:[#allocation2] sm:$0x3] %v390_v4  ;;  %v393_v15 = vadd.f32 %v392_v13, %v388_v14 }
  0x79   : > { %394 = vst [vmem:[#allocation3] sm:$0x3] %v393_v15 }
  0x7e   : > { %v401_v16 = vld [vmem:[#allocation2] sm:$0x3] }
  0x7f   : > { %v402_v17 = vsel %vm325_vm0, %v401_v16, 0.0 }
  0x80   : > { %403 = vadd.xlane.f32.xlu0 %v402_v17  ;;  %v414_v18 = vld [vmem:[#allocation3] sm:$0x3] }
  0x81   : > { %v415_v19 = vsel %vm325_vm0, %v414_v18, 0.0 }
  0x84   : > { %416 = vadd.xlane.f32.xlu0 %v415_v19 }
  0xdf   : > { %v430_v20 = vpop.xlane.xlu1 %429 }
  0xe0   : > { %v431_v21 = vrot.slane %v430_v20, 4 }
  0xe2   : > { %v432_v22 = vadd.f32 %v431_v21, %v430_v20 }
  0xe4   : > { %v433_v26 = vrot.slane %v432_v22, 2 }
  0xe6   : > { %v434_v32 = vadd.f32 %v433_v26, %v432_v22 }
  0xe8   : > { %v435_v37 = vrot.slane %v434_v32, 1 }
  0xea   : > { %v436_v40 = vadd.f32 %v435_v37, %v434_v32 }
 0x109   : > { %v404_v23 = vpop.xlane.xlu0 %403 }
 0x10a   : > { %v405_v24 = vrot.slane %v404_v23, 4 }
 0x10c   : > { %v406_v25 = vadd.f32 %v405_v24, %v404_v23 }
 0x10d   : > { %v417_v27 = vpop.xlane.xlu0 %416 }
 0x10e   : > { %v407_v28 = vrot.slane %v406_v25, 2  ;;  %v418_v29 = vrot.slane %v417_v27, 4 }
 0x110   : > { %v419_v30 = vadd.f32 %v418_v29, %v417_v27  ;;  %v408_v31 = vadd.f32 %v407_v28, %v406_v25 }
 0x112   : > { %v420_v33 = vrot.slane %v419_v30, 2  ;;  %v409_v34 = vrot.slane %v408_v31, 1 }
 0x114   : > { %v421_v35 = vadd.f32 %v420_v33, %v419_v30  ;;  %v410_v36 = vadd.f32 %v409_v34, %v408_v31 }
 0x116   : > { %672 = vpush %v410_v36  ;;  %v422_v38 = vrot.slane %v421_v35, 1 }
 0x118   : > { %v423_v39 = vadd.f32 %v422_v38, %v421_v35 }
 0x11a   : > { %674 = vpush %v423_v39 }
 0x11b   : > { %676 = vpush %v436_v40 }
 0x147   : > { %s673_s10 = spop %672 }
 0x148   : > { %v412_v41 = vstv %s673_s10 }
 0x149   : > { %413 = vst [vmem:[%s295_s29] sm:$0x1] %v412_v41 }
 0x14a   : > { %837 = shalt.err (!%p834_p7)
}
 0x14b   : > { %s838_s29 = scalar_lea.hbm %s1172_s25, 16  ;;  %s842_s6 = scalar_lea.hbm %s1296_s2, 32 }
 0x14c   : > { %p839_p10 = scmp.ne.s32.totalorder %s1172_s25, %s838_s29  ;;  %p843_p3 = scmp.lt.s32.totalorder %s1172_s25, %s1296_s2 }
 0x14d   : > { %p844_p8 = scmp.lt.s32.totalorder %s842_s6, %s838_s29 }
 0x14e   : > { %p840_p1 = pnand %p839_p10, %p1054_p9 }
 0x14f   : > { %p845_p0 = por %p844_p8, %p843_p3 }
 0x150   : > { %p841_p13 = pneg %p840_p1 }
 0x152   : > { %p846_p2 = pnand %p845_p0, %p841_p13 }
 0x154   : > { %849 = shalt.err (!%p846_p2)
}
 0x155   : > { %682 = dma.vmem_to_hbm [thread:$0]  (%p1054_p9), %s1174_s13, 16, %s1172_s25, %s441_s14  }
 0x156   : > { %s675_s0 = spop %674  ;;  %s1217_s29 = scalar_lea.hbm %s1298_s4, %s1161_s27 }
 0x157   : > { %v425_v42 = vstv %s675_s0  ;;  %s677_s26 = spop %676  ;;  %s1311_s10 = sand.u32 1, %s1030_s21  }
 0x158   : > { %426 = vst [vmem:[%s301_s18] sm:$0x1] %v425_v42  ;;  %v438_v43 = vstv %s677_s26  ;;  %s1225_s13 = scalar_lea.sflag [#allocation12], %s1311_s10  ;;  %s850_s25 = scalar_lea.vmem %s1211_s12, 16 }
 0x159   : > { %439 = vst [vmem:[%s307_s9] sm:$0x1] %v438_v43  ;;  %p851_p5 = scmp.ne.s32.totalorder %s1211_s12, %s850_s25  ;;  %s972_s14 = smov [#allocation11]  }
 0x15a   : > { %s854_s22 = sshll.u32 %s972_s14, 4  ;;  %s855_s22 = int_to_ptr.vmem [resolvable:$false] %s854_s22 }
 0x15b   : > { %p852_p6 = pnand %p851_p5, %p1054_p9  ;;  %s856_s6 = scalar_lea.vmem %s855_s22, 32 }
 0x15c   : > { %p857_p7 = scmp.lt.s32.totalorder %s1211_s12, %s855_s22  ;;  %p858_p10 = scmp.lt.s32.totalorder %s856_s6, %s850_s25 }
 0x15d   : > { %p853_p4 = pneg %p852_p6 }
 0x15e   : > { %p859_p1 = por %p858_p10, %p857_p7 }
 0x160   : > { %p860_p13 = pnand %p859_p1, %p853_p4 }
 0x162   : > { %863 = shalt.err (!%p860_p13)
}
 0x163   : > { %s864_s21 = scalar_lea.hbm %s1187_s7, 16  ;;  %s868_s9 = scalar_lea.hbm %s1297_s3, 32 }
 0x164   : > { %p865_p3 = scmp.ne.s32.totalorder %s1187_s7, %s864_s21  ;;  %p869_p2 = scmp.lt.s32.totalorder %s1187_s7, %s1297_s3 }
 0x165   : > { %p870_p5 = scmp.lt.s32.totalorder %s868_s9, %s864_s21 }
 0x166   : > { %p866_p8 = pnand %p865_p3, %p1054_p9 }
 0x167   : > { %p871_p6 = por %p870_p5, %p869_p2 }
 0x168   : > { %p867_p0 = pneg %p866_p8 }
 0x16a   : > { %p872_p4 = pnand %p871_p6, %p867_p0 }
 0x16c   : > { %875 = shalt.err (!%p872_p4)
}
 0x16d   : > { %683 = dma.vmem_to_hbm [thread:$0]  (%p1054_p9), %s1211_s12, 16, %s1187_s7, %s1225_s13  }
 0x16e   : > { %s876_s0 = scalar_lea.vmem %s1181_s11, 16  ;;  %s973_s26 = smov [#allocation13]  }
 0x16f   : > { %p877_p7 = scmp.ne.s32.totalorder %s1181_s11, %s876_s0  ;;  %s880_s24 = sshll.u32 %s973_s26, 4  ;;  %s881_s24 = int_to_ptr.vmem [resolvable:$false] %s880_s24 }
 0x170   : > { %s882_s8 = scalar_lea.vmem %s881_s24, 32  ;;  %p883_p13 = scmp.lt.s32.totalorder %s1181_s11, %s881_s24 }
 0x171   : > { %p878_p10 = pnand %p877_p7, %p1054_p9  ;;  %p884_p3 = scmp.lt.s32.totalorder %s882_s8, %s876_s0 }
 0x173   : > { %p879_p1 = pneg %p878_p10  ;;  %p885_p8 = por %p884_p3, %p883_p13 }
 0x175   : > { %p886_p0 = pnand %p885_p8, %p879_p1 }
 0x177   : > { %889 = shalt.err (!%p886_p0)
}
 0x178   : > { %s890_s10 = scalar_lea.hbm %s1217_s29, 16  ;;  %s894_s25 = scalar_lea.hbm %s1298_s4, 32 }
 0x179   : > { %p891_p2 = scmp.ne.s32.totalorder %s1217_s29, %s890_s10  ;;  %p895_p4 = scmp.lt.s32.totalorder %s1217_s29, %s1298_s4 }
 0x17a   : > { %p896_p7 = scmp.lt.s32.totalorder %s894_s25, %s890_s10 }
 0x17b   : > { %p892_p5 = pnand %p891_p2, %p1054_p9 }
 0x17c   : > { %p897_p10 = por %p896_p7, %p895_p4 }
 0x17d   : > { %p893_p6 = pneg %p892_p5 }
 0x17f   : > { %p898_p1 = pnand %p897_p10, %p893_p6 }
 0x181   : > { %901 = shalt.err (!%p898_p1)
}
 0x182   : > { %684 = dma.vmem_to_hbm [thread:$0]  (%p1054_p9), %s1181_s11, 16, %s1217_s29, %s1225_s13  }
 0x183 PF: > { %s502_s6 = sand.u32 1, %s944_s15   ;;  %p696_p13 = pnand %p655_p12, %p1063_p11 }
 0x184   : > { %s503_s21 = scalar_lea.sflag [#allocation7], %s502_s6 }
 0x185   : > { %p697_p3 = pneg %p696_p13 }
 0x187   : > { %935 = dma.done.wait (%p697_p3), %s503_s21, 16  }
 0x188   : > { %937 = vsyncadd (%p697_p3), %s503_s21, 4294967280  ;;  %s1312_s5 = sadd.s32 4294967294, %s964_s20  }
 0x189   : > { %s510_s27 = sand.u32 1, %s1312_s5  }
 0x18a   : > { %s511_s28 = scalar_lea.sflag [#allocation12], %s510_s27 }
 0x18b   : > { %939 = dma.done.wait (%p697_p3), %s511_s28, 32  }
 0x18c   : > { %941 = vsyncadd (%p697_p3), %s511_s28, 4294967264  ;;  %s27_s20 = sadd.s32 1, %s964_s20   ;;  %s1313_s11 = sld [smem:[#allocation19_spill]] }
 0x18d   : > { %p24_p9 = scmp.ge.s32.totalorder %s27_s20, 4   ;;  %s1314_s30 = sld [smem:[#allocation18_spill]] }
 0x18e   : > { %s1315_s15 = smov %s948_s16  ;;  %s1316_s16 = smov %s952_s17 }
 0x18f   : > { %s1318_s18 = smov %s960_s19  ;;  %26 = sbr.rel (!%p24_p9) target bundleno = 12 (0xc), region = 126 }
 0x192   : > { %s1317_s17 = smov %s1313_s11 }
 0x193   : > { %s1319_s19 = smov %s1314_s30 }
 0x194   :  { %523 = vsyncpa [#allocation6], 1 }
 0x195   :  { %525 = vsyncpa [#allocation6 + $0x1], 1 }
 0x196   :  { %526 = vsyncpa [#allocation9], 1 }
 0x197   :  { %528 = vsyncpa [#allocation9 + $0x1], 1 }
 0x198   :  { %529 = vsyncpa [#allocation7], 1 }
 0x199   :  { %531 = vsyncpa [#allocation7 + $0x1], 1 }
 0x19a   :  { %532 = vsyncpa [#allocation12], 1 }
 0x19b   :  { %534 = vsyncpa [#allocation12 + $0x1], 1 }

</bundles_post_ra>
